<compile_context>
chip_gen: v5e
topology: v5e:2x2
jax: 0.10.0
libtpu: 0.0.40
codegen_flags: <defaults>
</compile_context>

<pallas_src>
import functools

import jax
import jax.numpy as jnp
from jax.experimental import pallas as pl
from jax.experimental.pallas import tpu as pltpu


def _round_up(x, m):
    return (x + m - 1) // m * m


def _vmem_capacity_bytes():
    try:
        return int(pltpu.get_tpu_info().vmem_capacity_bytes)
    except Exception:
        return 64 << 20  # conservative default (v7x per-core VMEM)


def _choose_tiles(nc, hw, dsize, step_budget):
    """Pick (tm, thw) so one grid step moves ~step_budget bytes of input."""
    hw_lanes = _round_up(hw, 128)
    nc_rows = _round_up(nc, 8)
    # Prefer >= 2 row blocks when rows allow it so the "parallel" axis can be
    # split across the two TensorCores on v7x (costs at most 2x step size).
    tm_cap = nc_rows if nc <= 8 else _round_up(-(-nc // 2), 8)
    # Give the reduction axis as many lanes as the budget allows at the
    # minimum row tile, then spend the remainder of the budget on rows.
    thw = min(hw_lanes,
              max(512, (step_budget // (2 * 8 * dsize)) // 128 * 128))
    tm = min(tm_cap, max(8, (step_budget // (2 * thw * dsize)) // 8 * 8))
    return tm, thw


def _iou_rows_kernel(x_ref, y_ref, iou_ref, inter_acc, sum_acc, *,
                     smooth, last_valid_lanes):
    # x_ref / y_ref: (TM, THW) tiles in VMEM (auto double-buffered).
    # All pl.program_id / pl.num_programs calls stay at kernel top level
    # (calling them inside a pl.when body breaks lowering).
    k = pl.program_id(1)
    nk = pl.num_programs(1)
    is_last = k == nk - 1

    @pl.when(k == 0)
    def _():
        inter_acc[...] = jnp.zeros_like(inter_acc)
        sum_acc[...] = jnp.zeros_like(sum_acc)

    x = x_ref[...].astype(jnp.float32)
    y = y_ref[...].astype(jnp.float32)

    def _accumulate(xv, yv):
        # Two cross-lane (XLU) reductions per tile: intersection and the
        # fused sum_x + sum_y (one VPU add replaces a third reduction).
        inter_acc[...] += jnp.sum(xv * yv, axis=1, keepdims=True)
        sum_acc[...] += jnp.sum(xv + yv, axis=1, keepdims=True)

    if last_valid_lanes is None:
        # HW divides the tile width exactly: no masking anywhere.
        _accumulate(x, y)
    else:
        # Only the final reduction step has out-of-bounds lanes; mask them
        # (garbage could be NaN/Inf) and leave the hot path unmasked.
        @pl.when(is_last)
        def _():
            lane = jax.lax.broadcasted_iota(jnp.int32, x.shape, 1)
            valid = lane < last_valid_lanes
            _accumulate(jnp.where(valid, x, 0.0), jnp.where(valid, y, 0.0))

        @pl.when(jnp.logical_not(is_last))
        def _():
            _accumulate(x, y)

    @pl.when(is_last)
    def _():
        inter = inter_acc[...]                      # (TM, 1)
        union = sum_acc[...] - inter
        # Rows beyond N*C (ragged last row block) compute garbage here, but
        # Pallas masks their write-back since the output only has N*C rows.
        iou_ref[...] = (inter + smooth) / (union + smooth)


def iou_loss(outputs, targets, smooth=1.0):
    """JAX/Pallas equivalent of IoULoss.forward for NCHW inputs.

    bf16 inputs are the fast path (half the HBM bytes); accumulation is f32.
    """
    assert outputs.shape == targets.shape
    n, c, h, w = outputs.shape
    nc, hw = n * c, h * w

    x2d = outputs.reshape(nc, hw)
    y2d = targets.reshape(nc, hw)

    dsize = jnp.dtype(outputs.dtype).itemsize
    vmem_cap = _vmem_capacity_bytes()
    # ~16 MiB of input per grid step where VMEM is abundant (v5e/v6e),
    # ~8 MiB when VMEM is 64 MiB (v7x); amortizes the ~0.35us per-step cost.
    step_budget = min(16 << 20, vmem_cap // 8)
    tm, thw = _choose_tiles(nc, hw, dsize, step_budget)

    grid = (pl.cdiv(nc, tm), pl.cdiv(hw, thw))
    last_valid = hw - (grid[1] - 1) * thw
    last_valid_lanes = None if last_valid == thw else int(last_valid)

    in_buffer_bytes = 2 * 2 * tm * thw * dsize      # 2 inputs, double-buffered
    vmem_limit = int(min(max(in_buffer_bytes + (8 << 20), 16 << 20),
                         (vmem_cap * 3) // 4))

    cost = pl.CostEstimate(
        flops=4 * nc * hw,
        bytes_accessed=2 * nc * hw * dsize + nc * 4,
        transcendentals=0)

    kernel = functools.partial(
        _iou_rows_kernel, smooth=float(smooth),
        last_valid_lanes=last_valid_lanes)

    iou_rows = pl.pallas_call(
        kernel,
        out_shape=jax.ShapeDtypeStruct((nc, 1), jnp.float32),
        grid_spec=pltpu.PrefetchScalarGridSpec(
            num_scalar_prefetch=0,
            grid=grid,
            in_specs=[
                pl.BlockSpec((tm, thw), lambda i, k: (i, k)),
                pl.BlockSpec((tm, thw), lambda i, k: (i, k)),
            ],
            out_specs=pl.BlockSpec((tm, 1), lambda i, k: (i, 0)),
            scratch_shapes=[
                pltpu.VMEM((tm, 1), jnp.float32),   # intersection accumulator
                pltpu.VMEM((tm, 1), jnp.float32),   # sum_x + sum_y accumulator
            ],
        ),
        compiler_params=pltpu.CompilerParams(
            dimension_semantics=("parallel", "arbitrary"),
            vmem_limit_bytes=vmem_limit),
        cost_estimate=cost,
    )(x2d, y2d)

    # Tiny scalar epilogue: mean over the (n, c) rows, then 1 - mean.
    return 1.0 - jnp.sum(iou_rows) / nc


def _reference_iou_loss(outputs, targets, smooth=1.0):
    outputs = outputs.astype(jnp.float32)
    targets = targets.astype(jnp.float32)
    intersection = (outputs * targets).sum(axis=2).sum(axis=2)
    union = (outputs.sum(axis=2).sum(axis=2)
             + targets.sum(axis=2).sum(axis=2) - intersection)
    iou = (intersection + smooth) / (union + smooth)
    return 1.0 - iou.mean()


if __name__ == "__main__":
    key = jax.random.PRNGKey(0)
    k1, k2, k3, k4 = jax.random.split(key, 4)

    # Case 1: small NCHW, divisible after (8, 128) rounding.
    out1 = jax.nn.sigmoid(jax.random.normal(k1, (2, 4, 16, 16), jnp.float32))
    tgt1 = (jax.random.uniform(k2, (2, 4, 16, 16)) > 0.5).astype(jnp.float32)
    loss1 = iou_loss(out1, tgt1, smooth=1.0)
    jax.block_until_ready(loss1)
    ref1 = _reference_iou_loss(out1, tgt1, smooth=1.0)
    assert jnp.allclose(loss1, ref1, atol=1e-5, rtol=1e-5), (loss1, ref1)

    # Case 2: awkward shape exercising ragged row block + lane-tail masking.
    out2 = jax.nn.sigmoid(jax.random.normal(k3, (2, 3, 7, 9), jnp.float32))
    tgt2 = (jax.random.uniform(k4, (2, 3, 7, 9)) > 0.5).astype(jnp.float32)
    loss2 = iou_loss(out2, tgt2, smooth=1.0)
    jax.block_until_ready(loss2)
    ref2 = _reference_iou_loss(out2, tgt2, smooth=1.0)
    assert jnp.allclose(loss2, ref2, atol=1e-5, rtol=1e-5), (loss2, ref2)

    # Case 3: bf16 inputs pass through (half the HBM bytes), f32 accumulation.
    out3 = out1.astype(jnp.bfloat16)
    tgt3 = tgt1.astype(jnp.bfloat16)
    loss3 = iou_loss(out3, tgt3, smooth=1.0)
    jax.block_until_ready(loss3)
    ref3 = _reference_iou_loss(out3, tgt3, smooth=1.0)
    assert jnp.allclose(loss3, ref3, atol=1e-4, rtol=1e-4), (loss3, ref3)

    print("KERNEL_OK")
</pallas_src>

<mosaic_0001>
module attributes {stable_mosaic.version = 11 : i64} {
  func.func @_iou_rows_kernel(%arg0: i32, %arg1: i32, %arg2: memref<8x256xf32, #tpu.memory_space<vmem>>, %arg3: memref<8x256xf32, #tpu.memory_space<vmem>>, %arg4: memref<8x1xf32, #tpu.memory_space<vmem>>, %arg5: memref<8x1xf32, #tpu.memory_space<vmem>>, %arg6: memref<8x1xf32, #tpu.memory_space<vmem>>) attributes {dimension_semantics = [#tpu.dimension_semantics<parallel>, #tpu.dimension_semantics<arbitrary>], iteration_bounds = array<i64: 1, 1>, scalar_prefetch = 0 : i64, scratch_operands = 2 : i64, tpu.core_type = #tpu.core_type<tc>, window_params = [{transform_indices = @transform_0, window_bounds = array<i64: 8, 256>}, {transform_indices = @transform_1, window_bounds = array<i64: 8, 256>}, {transform_indices = @transform_2, window_bounds = array<i64: 8, 1>}]} {
    %c0_i32 = arith.constant 0 : i32
    %0 = arith.cmpi eq, %arg1, %c0_i32 : i32
    %c0_i32_0 = arith.constant 0 : i32
    %1 = arith.cmpi eq, %arg1, %c0_i32_0 : i32
    %2 = arith.extui %1 : i1 to i32
    %c0_i32_1 = arith.constant 0 : i32
    %3 = arith.cmpi ne, %2, %c0_i32_1 : i32
    scf.if %3 {
      %cst_15 = arith.constant 0.000000e+00 : f32
      %20 = vector.broadcast %cst_15 : f32 to vector<8x1xf32>
      %c0_16 = arith.constant 0 : index
      %c0_17 = arith.constant 0 : index
      %21 = vector.load %arg5[%c0_16, %c0_17] : memref<8x1xf32, #tpu.memory_space<vmem>>, vector<8x1xf32>
      tpu.vector_store %arg5[%c0_16, %c0_17], %20 {strides = array<i32>} : memref<8x1xf32, #tpu.memory_space<vmem>>, vector<8x1xf32>,
      %cst_18 = arith.constant 0.000000e+00 : f32
      %22 = vector.broadcast %cst_18 : f32 to vector<8x1xf32>
      %c0_19 = arith.constant 0 : index
      %c0_20 = arith.constant 0 : index
      %23 = vector.load %arg6[%c0_19, %c0_20] : memref<8x1xf32, #tpu.memory_space<vmem>>, vector<8x1xf32>
      tpu.vector_store %arg6[%c0_19, %c0_20], %22 {strides = array<i32>} : memref<8x1xf32, #tpu.memory_space<vmem>>, vector<8x1xf32>,
    } else {
    }
    %c0 = arith.constant 0 : index
    %c0_2 = arith.constant 0 : index
    %4 = vector.load %arg2[%c0, %c0_2] : memref<8x256xf32, #tpu.memory_space<vmem>>, vector<8x256xf32>
    %c0_3 = arith.constant 0 : index
    %c0_4 = arith.constant 0 : index
    %5 = vector.load %arg3[%c0_3, %c0_4] : memref<8x256xf32, #tpu.memory_space<vmem>>, vector<8x256xf32>
    %c0_5 = arith.constant 0 : index
    %c0_6 = arith.constant 0 : index
    %6 = vector.load %arg5[%c0_5, %c0_6] : memref<8x1xf32, #tpu.memory_space<vmem>>, vector<8x1xf32>
    %7 = arith.mulf %4, %5 : vector<8x256xf32>
    %cst = arith.constant dense<0.000000e+00> : vector<8xf32>
    %8 = vector.multi_reduction <add>, %7, %cst [1] : vector<8x256xf32> to vector<8xf32>
    %9 = vector.shape_cast %8 : vector<8xf32> to vector<8x1xf32>
    %10 = arith.addf %6, %9 : vector<8x1xf32>
    %c0_7 = arith.constant 0 : index
    %c0_8 = arith.constant 0 : index
    %11 = vector.load %arg5[%c0_7, %c0_8] : memref<8x1xf32, #tpu.memory_space<vmem>>, vector<8x1xf32>
    tpu.vector_store %arg5[%c0_7, %c0_8], %10 {strides = array<i32>} : memref<8x1xf32, #tpu.memory_space<vmem>>, vector<8x1xf32>,
    %c0_9 = arith.constant 0 : index
    %c0_10 = arith.constant 0 : index
    %12 = vector.load %arg6[%c0_9, %c0_10] : memref<8x1xf32, #tpu.memory_space<vmem>>, vector<8x1xf32>
    %13 = arith.addf %4, %5 : vector<8x256xf32>
    %cst_11 = arith.constant dense<0.000000e+00> : vector<8xf32>
    %14 = vector.multi_reduction <add>, %13, %cst_11 [1] : vector<8x256xf32> to vector<8xf32>
    %15 = vector.shape_cast %14 : vector<8xf32> to vector<8x1xf32>
    %16 = arith.addf %12, %15 : vector<8x1xf32>
    %c0_12 = arith.constant 0 : index
    %c0_13 = arith.constant 0 : index
    %17 = vector.load %arg6[%c0_12, %c0_13] : memref<8x1xf32, #tpu.memory_space<vmem>>, vector<8x1xf32>
    tpu.vector_store %arg6[%c0_12, %c0_13], %16 {strides = array<i32>} : memref<8x1xf32, #tpu.memory_space<vmem>>, vector<8x1xf32>,
    %18 = arith.extui %0 : i1 to i32
    %c0_i32_14 = arith.constant 0 : i32
    %19 = arith.cmpi ne, %18, %c0_i32_14 : i32
    scf.if %19 {
      %c0_15 = arith.constant 0 : index
      %c0_16 = arith.constant 0 : index
      %20 = vector.load %arg5[%c0_15, %c0_16] : memref<8x1xf32, #tpu.memory_space<vmem>>, vector<8x1xf32>
      %c0_17 = arith.constant 0 : index
      %c0_18 = arith.constant 0 : index
      %21 = vector.load %arg6[%c0_17, %c0_18] : memref<8x1xf32, #tpu.memory_space<vmem>>, vector<8x1xf32>
      %22 = arith.subf %21, %20 : vector<8x1xf32>
      %cst_19 = arith.constant 1.000000e+00 : f32
      %23 = vector.broadcast %cst_19 : f32 to vector<8x1xf32>
      %24 = arith.addf %20, %23 : vector<8x1xf32>
      %cst_20 = arith.constant 1.000000e+00 : f32
      %25 = vector.broadcast %cst_20 : f32 to vector<8x1xf32>
      %26 = arith.addf %22, %25 : vector<8x1xf32>
      %27 = arith.divf %24, %26 : vector<8x1xf32>
      %c0_21 = arith.constant 0 : index
      %c0_22 = arith.constant 0 : index
      %28 = vector.load %arg4[%c0_21, %c0_22] : memref<8x1xf32, #tpu.memory_space<vmem>>, vector<8x1xf32>
      tpu.vector_store %arg4[%c0_21, %c0_22], %27 {strides = array<i32>} : memref<8x1xf32, #tpu.memory_space<vmem>>, vector<8x1xf32>,
    } else {
    }
    return
  }
  func.func @transform_0(%arg0: i32, %arg1: i32) -> (i32, i32) {
    %c0_i32 = arith.constant 0 : i32
    return %arg0, %arg1 : i32, i32
  }
  func.func @transform_1(%arg0: i32, %arg1: i32) -> (i32, i32) {
    %c0_i32 = arith.constant 0 : i32
    return %arg0, %arg1 : i32, i32
  }
  func.func @transform_2(%arg0: i32, %arg1: i32) -> (i32, i32) {
    %c0_i32 = arith.constant 0 : i32
    %c0_i32_0 = arith.constant 0 : i32
    return %arg0, %c0_i32 : i32, i32
  }
}

</mosaic_0001>

<bundles_post_ra>
// kernel: tpu_custom_call.1
= control target key start
LH: loop header
LB: loop body
LE: loop exit
PB: predicated region body
PF: predicated region fallthrough
CT: control target
= control target key end

     0   :  { %7 = vsyncpa [#allocation5], 0  ;;  %s186_s0 = inlined_call_operand.hbm [shape: f32[8,256], index: 0, kind: input, shape index: {}]   ;;  %s187_s1 = inlined_call_operand.hbm [shape: f32[8,256], index: 1, kind: input, shape index: {}]   ;;  %s188_s2 = inlined_call_operand.vmem [shape: f32[8,1], index: 2, kind: output, shape index: {}]  }
   0x1   :  { %s14_s11 = sshll.u32 %s186_s0, 4  ;;  %s15_s11 = int_to_ptr.hbm [resolvable:$true] %s14_s11 }
   0x2   :  { %8 = vsyncpa [#allocation7], 0  ;;  %s154_s12 = smov [#allocation4]   ;;  %s25_s16 = sshll.u32 %s187_s1, 4  ;;  %s26_s16 = int_to_ptr.hbm [resolvable:$true] %s25_s16 }
   0x3   :  { %s16_s13 = sshll.u32 %s154_s12, 4  ;;  %s155_s17 = smov [#allocation6]   ;;  %s17_s13 = int_to_ptr.vmem [resolvable:$true] %s16_s13 }
   0x4   :  { %19 = dma.hbm_to_vmem [thread:$0]  %s15_s11, 256, %s17_s13, [#allocation5]  }
   0x5   :  { %s27_s18 = sshll.u32 %s155_s17, 4  ;;  %s28_s18 = int_to_ptr.vmem [resolvable:$true] %s27_s18 }
   0x6   :  { %30 = dma.hbm_to_vmem [thread:$0]  %s26_s16, 256, %s28_s18, [#allocation7]  }
   0x7   :  { %150 = dma.done.wait [#allocation5], 256  }
   0x8   :  { %151 = vsyncadd [#allocation5], 4294967040 }
   0x9   :  { %152 = dma.done.wait [#allocation7], 256  }
   0xa   :  { %153 = vsyncadd [#allocation7], 4294967040  ;;  %vm43_vm0 = vcmask 7168   ;;  %v156_v0 = vmov 0.0   ;;  %v46_v1 = vld [vmem:[#allocation4] sm:$0xff]  ;;  %v47_v2 = vld [vmem:[#allocation4 + $0x8] sm:$0xff] }
   0xb   :  { %44 = vst.msk [vmem:[#allocation2] sm:$0xff] %vm43_vm0, %v156_v0  ;;  %v48_v3 = vld [vmem:[#allocation6] sm:$0xff]  ;;  %v49_v4 = vld [vmem:[#allocation6 + $0x8] sm:$0xff] }
   0xc   :  { %45 = vst.msk [vmem:[#allocation3] sm:$0xff] %vm43_vm0, %v156_v0  ;;  %v51_v5 = vmul.f32 %v48_v3, %v46_v1  ;;  %v52_v6 = vmul.f32 %v49_v4, %v47_v2  ;;  %v60_v8 = vadd.f32 %v48_v3, %v46_v1  ;;  %v61_v9 = vadd.f32 %v49_v4, %v47_v2 }
   0xe   :  { %v53_v7 = vadd.f32 %v52_v6, %v51_v5  ;;  %v62_v10 = vadd.f32 %v61_v9, %v60_v8 }
  0x10   :  { %54 = vadd.xlane.f32.xlu0 %v53_v7 }
  0x12   :  { %v50_v11 = vld [vmem:[#allocation2] sm:$0xff] }
  0x13   :  { %v59_v14 = vld [vmem:[#allocation3] sm:$0xff] }
  0x18   :  { %63 = vadd.xlane.f32.xlu0 %v62_v10 }
  0x83   :  { %v55_v12 = vpop.xlane.xlu0 %54 }
  0x84   :  { %v56_v13 = vadd.f32 %v55_v12, %v50_v11 }
  0x86   :  { %58 = vst.msk [vmem:[#allocation2] sm:$0xff] %vm43_vm0, %v56_v13 }
  0x8b   :  { %v64_v15 = vpop.xlane.xlu0 %63 }
  0x8c   :  { %v65_v16 = vadd.f32 %v64_v15, %v59_v14 }
  0x8d   :  { %v70_v17 = vld [vmem:[#allocation2] sm:$0xff] }
  0x8e   :  { %66 = vst.msk [vmem:[#allocation3] sm:$0xff] %vm43_vm0, %v65_v16  ;;  %v73_v29 = vadd.f32 1.0, %v70_v17 }
  0x95   :  { %v71_v18 = vld [vmem:[#allocation3] sm:$0xff] }
  0x96   :  { %v72_v19 = vsub.f32 %v71_v18, %v70_v17 }
  0x98   :  { %v74_v20 = vadd.f32 1.0, %v72_v19 }
  0x9a   :  { %100 = vrcp.f32 %v74_v20  ;;  %v86_v24 = vand.u32 2147483648, %v74_v20  ;;  %v84_v26 = vand.u32 2147483647, %v74_v20  ;;  %vm80_vm2 = vweird.f32 %v74_v20 }
  0x9c   :  { %v87_v28 = vor.u32 1.1754944e-38, %v86_v24  ;;  %vm85_vm4 = vcmp.eq.f32.partialorder %v84_v26, 8.507059e+37 }
  0xa0   :  { %v101_v21 = vpop.eup %100 }
  0xa1   :  { %v76_v22 = vmul.f32 %v101_v21, %v74_v20  ;;  %vm81_vm1 = vweird.f32 %v101_v21 }
  0xa2   :  { %vm82_vm3 = vmor %vm80_vm2, %vm81_vm1 }
  0xa3   :  { %v77_v23 = vsub.f32 1.0, %v76_v22 }
  0xa5   :  { %v78_v25 = vmul.f32 %v101_v21, %v77_v23 }
  0xa7   :  { %v79_v27 = vadd.f32 %v101_v21, %v78_v25 }
  0xa9   :  { %v83_v30 = vsel %vm82_vm3, %v101_v21, %v79_v27 }
  0xaa   :  { %v88_v31 = vsel %vm85_vm4, %v87_v28, %v83_v30 }
  0xab   :  { %v89_v32 = vmul.f32 %v88_v31, %v73_v29 }
  0xad   :  { %90 = vst.msk [vmem:[%s188_s2] sm:$0xff] %vm43_vm0, %v89_v32 }
  0xae   :  { %95 = vsyncpa [#allocation5], 1 }
  0xaf   :  { %96 = vsyncpa [#allocation7], 1 }

</bundles_post_ra>
